<compile_context>
chip_gen: v7x
topology: tpu7x:2x2x1
jax: 0.10.0
libtpu: 0.0.40
codegen_flags: <defaults>
</compile_context>

<pallas_src>
import functools

import jax
import jax.numpy as jnp
from jax import lax
from jax.experimental import pallas as pl
from jax.experimental.pallas import tpu as pltpu


def _pick_tile(n, candidates):
    """Largest candidate that evenly divides n (falls back to n itself)."""
    for c in candidates:
        if c <= n and n % c == 0:
            return c
    return n


def _const_spec(block_shape, index_map):
    """BlockSpec for a block whose index never changes: single VMEM buffer."""
    return pl.BlockSpec(block_shape, index_map, pipeline_mode=pl.Buffered(1))


# ---------------------------------------------------------------------------
# Stage 1: fused QKV projection (hoisted out of the attention kernel).
# ---------------------------------------------------------------------------
def _qkv_proj_kernel(x_ref, w_ref, b_ref, q_ref, k_ref, v_ref):
    x = x_ref[...]                                                  # (tt, C) bf16
    qkv = jnp.dot(x, w_ref[...],
                  preferred_element_type=jnp.float32) + b_ref[...]  # (tt, 3C) f32
    C = q_ref.shape[-1]
    q_ref[...] = qkv[:, 0 * C:1 * C].astype(q_ref.dtype)            # pre-scaled Q
    k_ref[...] = qkv[:, 1 * C:2 * C].astype(k_ref.dtype)
    v_ref[...] = qkv[:, 2 * C:3 * C].astype(v_ref.dtype)


# ---------------------------------------------------------------------------
# Stage 2: causal attention (in-kernel head loop, flash-style kv tiling)
#          with the head-concat + output projection folded in.
# ---------------------------------------------------------------------------
def _attn_kernel(q_ref, k_ref, v_ref, w_proj_ref, b_proj_ref, o_ref, *,
                 num_heads, head_size, q_tile, kv_tile, approx_recip):
    H, hs, tq, tk = num_heads, head_size, q_tile, kv_tile
    qi = pl.program_id(1)

    q = q_ref[...]                                              # (tq, C) bf16, 1/sqrt(hs) folded
    q_heads = [q[:, h * hs:(h + 1) * hs] for h in range(H)]     # static lane slices

    # Causal-mask iotas: built once per q tile, reused by every kv tile & head.
    row = qi * tq + lax.broadcasted_iota(jnp.int32, (tq, tk), 0)   # global query row
    col = lax.broadcasted_iota(jnp.int32, (tq, tk), 1)             # column within a kv tile
    neg_big = jnp.float32(-1e30)   # finite fill; col 0 is always unmasked for causal rows

    def kv_step(t, carry):
        ms, ls, accs = carry
        start = pl.multiple_of(t * tk, tk)
        k_t = k_ref[pl.ds(start, tk), :]                        # (tk, C) bf16
        v_t = v_ref[pl.ds(start, tk), :]                        # (tk, C) bf16
        mask = (start + col) <= row                             # (tq, tk)

        new_ms, new_ls, new_accs = [], [], []
        for h in range(H):                                      # heads in-kernel (review #1)
            k_h = k_t[:, h * hs:(h + 1) * hs]                   # (tk, hs)
            v_h = v_t[:, h * hs:(h + 1) * hs]                   # (tk, hs)
            # scores: contract the head dim of both operands (no explicit transpose)
            s = jnp.einsum('qd,kd->qk', q_heads[h], k_h,
                           preferred_element_type=jnp.float32)  # (tq, tk) f32
            s = jnp.where(mask, s, neg_big)
            # online-softmax update (flash style, f32 math)
            m_new = jnp.maximum(ms[h], jnp.max(s, axis=-1, keepdims=True))
            alpha = jnp.exp(ms[h] - m_new)
            p = jnp.exp(s - m_new)
            l_new = alpha * ls[h] + jnp.sum(p, axis=-1, keepdims=True)
            acc_new = alpha * accs[h] + jnp.dot(
                p.astype(jnp.bfloat16), v_h, preferred_element_type=jnp.float32)
            new_ms.append(m_new)
            new_ls.append(l_new)
            new_accs.append(acc_new)
        return tuple(new_ms), tuple(new_ls), tuple(new_accs)

    init = (tuple(jnp.full((tq, 1), neg_big, jnp.float32) for _ in range(H)),
            tuple(jnp.zeros((tq, 1), jnp.float32) for _ in range(H)),
            tuple(jnp.zeros((tq, hs), jnp.float32) for _ in range(H)))

    # Causal skip: only kv tiles intersecting [0, qi*tq + tq) are visited.
    n_kv = pl.cdiv(qi * tq + tq, tk)
    ms, ls, accs = lax.fori_loop(0, n_kv, kv_step, init)

    # Normalize, concat heads along lanes, ONE full-C output projection (review #2).
    outs = [(accs[h] * pl.reciprocal(ls[h], approx=approx_recip)).astype(jnp.bfloat16)
            for h in range(H)]
    concat = jnp.concatenate(outs, axis=-1)                     # (tq, C) bf16
    y = jnp.dot(concat, w_proj_ref[...],
                preferred_element_type=jnp.float32) + b_proj_ref[...]
    o_ref[...] = y.astype(o_ref.dtype)


# ---------------------------------------------------------------------------
# Wrapper
# ---------------------------------------------------------------------------
def causal_self_attention(x, w_attn, b_attn, w_proj, b_proj, *,
                          num_heads, head_size, approx_reciprocal=True):
    """x: (B,T,C); w_attn: (C,3C); b_attn: (3C,); w_proj: (C,C); b_proj: (C,)."""
    B, T, C = x.shape
    H, hs = num_heads, head_size
    assert C == H * hs
    assert w_attn.shape == (C, 3 * C) and b_attn.shape == (3 * C,)
    assert w_proj.shape == (C, C) and b_proj.shape == (C,)

    # Large tiles amortize ~0.35us/grid-step overhead (review #8/#9).
    t_tile = _pick_tile(T, (512, 256, 128, 64, 32, 16, 8))    # projection row tile
    q_tile = _pick_tile(T, (256, 128, 64, 32, 16, 8))         # attention query tile
    kv_tile = _pick_tile(T, (512, 256, 128, 64, 32, 16, 8))   # attention kv tile
    n_t, n_q = T // t_tile, T // q_tile

    # Fold 1/sqrt(hs) into the Q columns of the fused QKV weight/bias.
    scale = hs ** (-0.5)
    col_scale = jnp.concatenate([jnp.full((C,), scale, jnp.float32),
                                 jnp.ones((2 * C,), jnp.float32)])
    w_qkv = (w_attn.astype(jnp.float32) * col_scale[None, :]).astype(jnp.bfloat16)
    b_qkv = (b_attn.astype(jnp.float32) * col_scale).reshape(1, 3 * C)
    w_proj_bf = w_proj.astype(jnp.bfloat16)
    b_proj2 = b_proj.astype(jnp.float32).reshape(1, C)
    x_bf = x.astype(jnp.bfloat16)            # bf16 MXU operands, f32 accumulation

    vmem_limit = 64 * 1024 * 1024            # retune per generation (<=48 MiB on v7x)

    # ---- Stage 1: fused QKV projection -------------------------------------
    proj_cost = pl.CostEstimate(
        flops=2 * B * T * C * 3 * C,
        transcendentals=0,
        bytes_accessed=B * T * C * 2 + 3 * C * C * 2 + 3 * B * T * C * 2)
    q, k, v = pl.pallas_call(
        _qkv_proj_kernel,
        out_shape=(jax.ShapeDtypeStruct((B, T, C), jnp.bfloat16),) * 3,
        grid_spec=pltpu.PrefetchScalarGridSpec(
            num_scalar_prefetch=0,
            grid=(B, n_t),
            in_specs=[
                pl.BlockSpec((None, t_tile, C), lambda b, t: (b, t, 0)),   # x row tile
                _const_spec((C, 3 * C), lambda b, t: (0, 0)),              # w_qkv (resident)
                _const_spec((1, 3 * C), lambda b, t: (0, 0)),              # b_qkv (resident)
            ],
            out_specs=[
                pl.BlockSpec((None, t_tile, C), lambda b, t: (b, t, 0)),
                pl.BlockSpec((None, t_tile, C), lambda b, t: (b, t, 0)),
                pl.BlockSpec((None, t_tile, C), lambda b, t: (b, t, 0)),
            ],
        ),
        compiler_params=pltpu.CompilerParams(
            dimension_semantics=("parallel", "parallel"),
            vmem_limit_bytes=vmem_limit,
        ),
        cost_estimate=proj_cost,
    )(x_bf, w_qkv, b_qkv)

    # ---- Stage 2: causal attention + folded output projection --------------
    kernel = functools.partial(_attn_kernel, num_heads=H, head_size=hs,
                               q_tile=q_tile, kv_tile=kv_tile,
                               approx_recip=approx_reciprocal)
    attn_cost = pl.CostEstimate(
        flops=2 * B * T * T * C + 2 * B * T * C * C,   # causal QK^T + AV, plus out proj
        transcendentals=B * H * T * T // 2,
        bytes_accessed=3 * B * T * C * 2 + C * C * 2 + B * T * C * x.dtype.itemsize)
    return pl.pallas_call(
        kernel,
        out_shape=jax.ShapeDtypeStruct((B, T, C), x.dtype),
        grid_spec=pltpu.PrefetchScalarGridSpec(
            num_scalar_prefetch=0,
            grid=(B, n_q),
            in_specs=[
                pl.BlockSpec((None, q_tile, C), lambda b, qi: (b, qi, 0)),  # Q tile
                pl.BlockSpec((None, T, C), lambda b, qi: (b, 0, 0)),        # K (per batch)
                pl.BlockSpec((None, T, C), lambda b, qi: (b, 0, 0)),        # V (per batch)
                _const_spec((C, C), lambda b, qi: (0, 0)),                  # w_proj (resident)
                _const_spec((1, C), lambda b, qi: (0, 0)),                  # b_proj (resident)
            ],
            out_specs=pl.BlockSpec((None, q_tile, C), lambda b, qi: (b, qi, 0)),
        ),
        compiler_params=pltpu.CompilerParams(
            # No cross-step carried state -> both axes independent; lets the
            # v7x megacore split work over (batch, q-tile) (review #7).
            dimension_semantics=("parallel", "parallel"),
            vmem_limit_bytes=vmem_limit,
        ),
        cost_estimate=attn_cost,
    )(q, k, v, w_proj_bf, b_proj2)


def _reference(x, w_attn, b_attn, w_proj, b_proj, *, num_heads, head_size):
    """Pure-JAX f32 reference mirroring the PyTorch forward."""
    B, T, C = x.shape
    qkv = x @ w_attn + b_attn
    q, k, v = qkv[..., :C], qkv[..., C:2 * C], qkv[..., 2 * C:]

    def split_heads(t):
        return t.reshape(B, T, num_heads, head_size).transpose(0, 2, 1, 3)

    q, k, v = split_heads(q), split_heads(k), split_heads(v)
    wei = (q @ k.transpose(0, 1, 3, 2)) * head_size ** (-0.5)
    mask = jnp.tril(jnp.ones((T, T), dtype=bool))
    wei = jnp.where(mask, wei, -jnp.inf)
    wei = jax.nn.softmax(wei, axis=-1)
    out = (wei @ v).transpose(0, 2, 1, 3).reshape(B, T, C)
    return out @ w_proj + b_proj


if __name__ == "__main__":
    B, T = 2, 8
    n_embds, num_heads = 32, 4
    head_size = n_embds // num_heads

    key = jax.random.PRNGKey(0)
    kx, k1, k2, k3, k4 = jax.random.split(key, 5)

    x = jax.random.normal(kx, (B, T, n_embds), dtype=jnp.float32)
    # PyTorch Linear stores weight as (out, in); pre-transposed to (in, out).
    w_attn = jax.random.normal(k1, (n_embds, 3 * n_embds), jnp.float32) * 0.1
    b_attn = jax.random.normal(k2, (3 * n_embds,), jnp.float32) * 0.1
    w_proj = jax.random.normal(k3, (n_embds, n_embds), jnp.float32) * 0.1
    b_proj = jax.random.normal(k4, (n_embds,), jnp.float32) * 0.1

    y = causal_self_attention(x, w_attn, b_attn, w_proj, b_proj,
                              num_heads=num_heads, head_size=head_size)
    y = jax.block_until_ready(y)

    y_ref = _reference(x, w_attn, b_attn, w_proj, b_proj,
                       num_heads=num_heads, head_size=head_size)
    assert y.shape == (B, T, n_embds)
    # bf16 MXU operands (f32 accumulation) + approx reciprocal -> looser tol
    # than a pure-f32 comparison.
    err = float(jnp.max(jnp.abs(y - y_ref)))
    assert jnp.allclose(y, y_ref, atol=2e-2, rtol=2e-2), f"max abs err {err}"

    print("KERNEL_OK")
</pallas_src>

<mosaic_0001>
module attributes {stable_mosaic.version = 11 : i64} {
  func.func @_qkv_proj_kernel(%arg0: i32, %arg1: i32, %arg2: memref<1x8x32xbf16, #tpu.memory_space<vmem>>, %arg3: memref<32x96xbf16, #tpu.memory_space<vmem>>, %arg4: memref<1x96xf32, #tpu.memory_space<vmem>>, %arg5: memref<1x8x32xbf16, #tpu.memory_space<vmem>>, %arg6: memref<1x8x32xbf16, #tpu.memory_space<vmem>>, %arg7: memref<1x8x32xbf16, #tpu.memory_space<vmem>>) attributes {dimension_semantics = [#tpu.dimension_semantics<parallel>, #tpu.dimension_semantics<parallel>], iteration_bounds = array<i64: 2, 1>, scalar_prefetch = 0 : i64, scratch_operands = 0 : i64, tpu.core_type = #tpu.core_type<tc>, window_params = [{transform_indices = @transform_0, window_bounds = array<i64: 1, 8, 32>}, {pipeline_mode = #tpu.pipeline_mode<synchronous>, transform_indices = @transform_1, window_bounds = array<i64: 32, 96>}, {pipeline_mode = #tpu.pipeline_mode<synchronous>, transform_indices = @transform_2, window_bounds = array<i64: 1, 96>}, {transform_indices = @transform_3, window_bounds = array<i64: 1, 8, 32>}, {transform_indices = @transform_4, window_bounds = array<i64: 1, 8, 32>}, {transform_indices = @transform_5, window_bounds = array<i64: 1, 8, 32>}]} {
    %c0 = arith.constant 0 : index
    %c0_0 = arith.constant 0 : index
    %c0_1 = arith.constant 0 : index
    %0 = vector.load %arg2[%c0, %c0_0, %c0_1] : memref<1x8x32xbf16, #tpu.memory_space<vmem>>, vector<1x8x32xbf16>
    %1 = vector.shape_cast %0 : vector<1x8x32xbf16> to vector<8x32xbf16>
    %c0_2 = arith.constant 0 : index
    %c0_3 = arith.constant 0 : index
    %2 = vector.load %arg3[%c0_2, %c0_3] : memref<32x96xbf16, #tpu.memory_space<vmem>>, vector<32x96xbf16>
    %cst = arith.constant dense<0.000000e+00> : vector<8x96xf32>
    %3 = tpu.matmul %1, %2, %cst {dimension_numbers = #tpu.dot_dimension_numbers<[1], [0], [0], [1], [0, 0, 1, 1], [], []>} : vector<8x32xbf16>, vector<32x96xbf16>, vector<8x96xf32> -> vector<8x96xf32>
    %c0_4 = arith.constant 0 : index
    %c0_5 = arith.constant 0 : index
    %4 = vector.load %arg4[%c0_4, %c0_5] : memref<1x96xf32, #tpu.memory_space<vmem>>, vector<1x96xf32>
    %5 = vector.broadcast %4 : vector<1x96xf32> to vector<8x96xf32>
    %6 = arith.addf %3, %5 : vector<8x96xf32>
    %7 = vector.extract_strided_slice %6 {offsets = [0, 0], sizes = [8, 32], strides = [1, 1]} : vector<8x96xf32> to vector<8x32xf32>
    %8 = arith.truncf %7 : vector<8x32xf32> to vector<8x32xbf16>
    %c0_6 = arith.constant 0 : index
    %c0_7 = arith.constant 0 : index
    %c0_8 = arith.constant 0 : index
    %9 = vector.load %arg5[%c0_6, %c0_7, %c0_8] : memref<1x8x32xbf16, #tpu.memory_space<vmem>>, vector<1x8x32xbf16>
    %10 = vector.shape_cast %9 : vector<1x8x32xbf16> to vector<8x32xbf16>
    %11 = vector.shape_cast %8 : vector<8x32xbf16> to vector<1x8x32xbf16>
    tpu.vector_store %arg5[%c0_6, %c0_7, %c0_8], %11 {strides = array<i32>} : memref<1x8x32xbf16, #tpu.memory_space<vmem>>, vector<1x8x32xbf16>,
    %12 = vector.extract_strided_slice %6 {offsets = [0, 32], sizes = [8, 32], strides = [1, 1]} : vector<8x96xf32> to vector<8x32xf32>
    %13 = arith.truncf %12 : vector<8x32xf32> to vector<8x32xbf16>
    %c0_9 = arith.constant 0 : index
    %c0_10 = arith.constant 0 : index
    %c0_11 = arith.constant 0 : index
    %14 = vector.load %arg6[%c0_9, %c0_10, %c0_11] : memref<1x8x32xbf16, #tpu.memory_space<vmem>>, vector<1x8x32xbf16>
    %15 = vector.shape_cast %14 : vector<1x8x32xbf16> to vector<8x32xbf16>
    %16 = vector.shape_cast %13 : vector<8x32xbf16> to vector<1x8x32xbf16>
    tpu.vector_store %arg6[%c0_9, %c0_10, %c0_11], %16 {strides = array<i32>} : memref<1x8x32xbf16, #tpu.memory_space<vmem>>, vector<1x8x32xbf16>,
    %17 = vector.extract_strided_slice %6 {offsets = [0, 64], sizes = [8, 32], strides = [1, 1]} : vector<8x96xf32> to vector<8x32xf32>
    %18 = arith.truncf %17 : vector<8x32xf32> to vector<8x32xbf16>
    %c0_12 = arith.constant 0 : index
    %c0_13 = arith.constant 0 : index
    %c0_14 = arith.constant 0 : index
    %19 = vector.load %arg7[%c0_12, %c0_13, %c0_14] : memref<1x8x32xbf16, #tpu.memory_space<vmem>>, vector<1x8x32xbf16>
    %20 = vector.shape_cast %19 : vector<1x8x32xbf16> to vector<8x32xbf16>
    %21 = vector.shape_cast %18 : vector<8x32xbf16> to vector<1x8x32xbf16>
    tpu.vector_store %arg7[%c0_12, %c0_13, %c0_14], %21 {strides = array<i32>} : memref<1x8x32xbf16, #tpu.memory_space<vmem>>, vector<1x8x32xbf16>,
    return
  }
  func.func @transform_0(%arg0: i32, %arg1: i32) -> (i32, i32, i32) {
    %c0_i32 = arith.constant 0 : i32
    %c0_i32_0 = arith.constant 0 : i32
    return %arg0, %arg1, %c0_i32 : i32, i32, i32
  }
  func.func @transform_1(%arg0: i32, %arg1: i32) -> (i32, i32) {
    %c0_i32 = arith.constant 0 : i32
    %c0_i32_0 = arith.constant 0 : i32
    %c0_i32_1 = arith.constant 0 : i32
    return %c0_i32, %c0_i32_0 : i32, i32
  }
  func.func @transform_2(%arg0: i32, %arg1: i32) -> (i32, i32) {
    %c0_i32 = arith.constant 0 : i32
    %c0_i32_0 = arith.constant 0 : i32
    %c0_i32_1 = arith.constant 0 : i32
    return %c0_i32, %c0_i32_0 : i32, i32
  }
  func.func @transform_3(%arg0: i32, %arg1: i32) -> (i32, i32, i32) {
    %c0_i32 = arith.constant 0 : i32
    %c0_i32_0 = arith.constant 0 : i32
    return %arg0, %arg1, %c0_i32 : i32, i32, i32
  }
  func.func @transform_4(%arg0: i32, %arg1: i32) -> (i32, i32, i32) {
    %c0_i32 = arith.constant 0 : i32
    %c0_i32_0 = arith.constant 0 : i32
    return %arg0, %arg1, %c0_i32 : i32, i32, i32
  }
  func.func @transform_5(%arg0: i32, %arg1: i32) -> (i32, i32, i32) {
    %c0_i32 = arith.constant 0 : i32
    %c0_i32_0 = arith.constant 0 : i32
    return %arg0, %arg1, %c0_i32 : i32, i32, i32
  }
}

</mosaic_0001>

<bundles_post_ra>
// kernel: tpu_custom_call.1
= control target key start
LH: loop header
LB: loop body
LE: loop exit
PB: predicated region body
PF: predicated region fallthrough
CT: control target
= control target key end

     0   :  { %11 = vsyncpa [#allocation3], 0  ;;  %s1354_s0 = inlined_call_operand.hbm [shape: bf16[2,8,32], index: 0, kind: input, shape index: {}]   ;;  %s1355_s1 = inlined_call_operand.hbm [shape: bf16[32,96], index: 1, kind: input, shape index: {}]   ;;  %s1356_s2 = inlined_call_operand.hbm [shape: f32[1,96], index: 2, kind: input, shape index: {}]   ;;  %s1357_s3 = inlined_call_operand.hbm [shape: bf16[2,8,32], index: 3, kind: output, shape index: {0}]   ;;  %s1358_s4 = inlined_call_operand.hbm [shape: bf16[2,8,32], index: 4, kind: output, shape index: {1}]   ;;  %s1359_s5 = inlined_call_operand.hbm [shape: bf16[2,8,32], index: 5, kind: output, shape index: {2}]  }
   0x1   :  { %13 = vsyncpa [#allocation3 + $0x1], 0 }
   0x2   :  { %14 = vsyncpa [#allocation6], 0 }
   0x3   :  { %15 = vsyncpa [#allocation4], 0 }
   0x4   :  { %17 = vsyncpa [#allocation4 + $0x1], 0 }
   0x5   :  { %18 = vsyncpa [#allocation10], 0 }
   0x6   :  { %20 = vsyncpa [#allocation10 + $0x1], 0  ;;  %s1021_s18 = smov 0   ;;  %s1023_s19 = smov 0  }
   0x7   :  { %s1025_s20 = smov 0   ;;  %s1027_s21 = smov 0  }
   0x8   :  { %s1029_s22 = smov 0   ;;  %s1031_s23 = smov 0  }
   0x9 LB: > { %s1052_s24 = sadd.s32 4294967295, %s977_s23   ;;  %s605_s25 = sadd.s32 4294967294, %s977_s23   ;;  %s977_s23 = sphi %s1031_s23, %s26_s23   ;;  %s973_s22 = sphi %s1029_s22, %s1380_s22   ;;  %s969_s21 = sphi %s1027_s21, %s1379_s21   ;;  %s965_s20 = sphi %s1025_s20, %s1378_s20   ;;  %s961_s19 = sphi %s1023_s19, %s1377_s19   ;;  %s957_s18 = sphi %s1021_s18, %s1376_s18  }
   0xa   : > { %p60_p0 = scmp.ne.s32.totalorder %s961_s19, %s957_s18  ;;  %p1360_p1 = scmp.eq.s32.totalorder %s1052_s24, 0 }
   0xb   : > { %p134_p3 = scmp.eq.s32.totalorder %s605_s25, 1  ;;  %p606_p5 = scmp.ge.s32.totalorder %s977_s23, 1 }
   0xc   : > { %p1063_p4 = por %p1360_p1, %p60_p0  ;;  %p197_p7 = scmp.lt.s32.totalorder %s977_s23, 3 }
   0xd   : > { %p1068_p6 = por %p134_p3, %p60_p0  ;;  %s979_s29 = smov [#allocation5]  }
   0xe   : > { %s1363_s26 = scalar_select %p1063_p4, 1, 0 }
   0xf   : > { %s1364_s27 = scalar_select %p1068_p6, 1, 0 }
  0x10   : > { %p1073_p8 = pnand %p606_p5, %p197_p7  ;;  %s209_s30 = sshll.u32 %s979_s29, 4  ;;  %s1077_s30 = int_to_ptr.vmem [resolvable:$true] %s209_s30 }
  0x11   : > { %s980_s7 = smov [#allocation7]   ;;  %s745_s11 = scalar_lea.hbm %s1355_s1, 256 }
  0x12   : > { %p660_p9 = pneg %p1073_p8  ;;  %s223_s8 = sshll.u32 %s980_s7, 4  ;;  %s1088_s8 = int_to_ptr.vmem [resolvable:$true] %s223_s8 }
  0x13   : > { %p746_p12 = scmp.ne.s32.totalorder %s1355_s1, %s745_s11  ;;  %p752_p5 = scmp.lt.u32.totalorder %s745_s11, %s1355_s1 }
  0x14   : > { %p1084_p11 = pnand %p660_p9, %p1360_p1 }
  0x16   : > { %p747_p13 = pneg %p1084_p11 }
  0x18   : > { %p748_p0 = pnand %p747_p13, %p746_p12 }
  0x1a   : > { %p749_p3 = pneg %p748_p0 }
  0x1c   : > { %p754_p7 = pnand %p752_p5, %p749_p3 }
  0x1e   : > { %757 = shalt.err (!%p754_p7)
}
  0x1f   : > { %s758_s16 = scalar_lea.vmem %s1077_s30, 256  ;;  %p766_p2 = scmp.lt.s32.totalorder %s1077_s30, %s1077_s30 }
  0x20   : > { %p759_p9 = scmp.ne.s32.totalorder %s1077_s30, %s758_s16  ;;  %p767_p12 = scmp.lt.s32.totalorder %s758_s16, %s758_s16 }
  0x22   : > { %p761_p10 = pnand %p759_p9, %p747_p13  ;;  %p768_p0 = por %p767_p12, %p766_p2 }
  0x24   : > { %p762_p1 = pneg %p761_p10 }
  0x26   : > { %p769_p6 = pnand %p768_p0, %p762_p1 }
  0x28   : > { %772 = shalt.err (!%p769_p6)
}
  0x29   : > { %s981_s17 = smov 64   ;;  %s982_s29 = smov 4  }
  0x2a   : > { %663 = dma.hbm_to_vmem [thread:$0]  (!%p1084_p11), %s1355_s1, 256, %s1077_s30, [#allocation6], %s981_s17, %s981_s17, %s982_s29  }
  0x2b   : > { %s773_s12 = scalar_lea.hbm %s1356_s2, 16 }
  0x2c   : > { %p774_p2 = scmp.ne.s32.totalorder %s1356_s2, %s773_s12  ;;  %p780_p10 = scmp.lt.u32.totalorder %s773_s12, %s1356_s2 }
  0x2e   : > { %p776_p1 = pnand %p774_p2, %p747_p13 }
  0x30   : > { %p777_p6 = pneg %p776_p1 }
  0x32   : > { %p782_p3 = pnand %p780_p10, %p777_p6 }
  0x34   : > { %785 = shalt.err (!%p782_p3)
}
  0x35   : > { %s786_s30 = scalar_lea.vmem %s1088_s8, 16  ;;  %s793_s17 = scalar_lea.vmem %s1088_s8, 32 }
  0x36   : > { %p787_p5 = scmp.ne.s32.totalorder %s1088_s8, %s786_s30  ;;  %p794_p12 = scmp.lt.s32.totalorder %s1088_s8, %s1088_s8 }
  0x37   : > { %p795_p0 = scmp.lt.s32.totalorder %s793_s17, %s786_s30 }
  0x38   : > { %p789_p7 = pnand %p787_p5, %p747_p13 }
  0x39   : > { %p796_p2 = por %p795_p0, %p794_p12 }
  0x3a   : > { %p790_p9 = pneg %p789_p7 }
  0x3c   : > { %p797_p1 = pnand %p796_p2, %p790_p9 }
  0x3e   : > { %800 = shalt.err (!%p797_p1)
}
  0x3f   : > { %666 = dma.hbm_to_vmem [thread:$0]  (!%p1084_p11), %s1356_s2, 16, %s1088_s8, [#allocation6]  }
  0x40   : > { %s38_s9 = sadd.s32 1, %s973_s22  ;;  %s47_s10 = sadd.s32 1, %s965_s20 }
  0x41   : > { %p40_p13 = scmp.ge.s32.totalorder %s38_s9, 2  ;;  %p54_p6 = scmp.ne.s32.totalorder %s965_s20, %s961_s19 }
  0x42   : > { %p55_p10 = scmp.eq.s32.totalorder %s977_s23, 0  ;;  %p683_p3 = scmp.lt.s32.totalorder %s977_s23, 2 }
  0x43   : > { %s1382_s9 = smov (%p40_p13, %s38_s9), 0  ;;  %p1367_p7 = scmp.eq.s32.totalorder %s1052_s24, 1 }
  0x44   : > { %p56_p5 = por %p55_p10, %p54_p6  ;;  %s42_s11 = ssub.s32 %s973_s22, %s1382_s9 }
  0x45   : > { %p1153_p9 = por %p1367_p7, %p54_p6  ;;  %s234_s12 = sand.u32 1, %s965_s20  }
  0x46   : > { %p45_p12 = scmp.eq.s32.totalorder %s42_s11, 0  ;;  %s610_s8 = sshll.u32 %s234_s12, 2 }
  0x47   : > { %s1368_s6 = scalar_select %p1153_p9, 1, 0 }
  0x48   : > { %s611_s13 = sshll.u32 %s973_s22, 6  ;;  %s238_s17 = scalar_lea.vmem [#allocation2], %s610_s8 }
  0x49   : > { %s1162_s14 = scalar_select %p45_p12, %s965_s20, %s47_s10  }
  0x4a   : > { %s1167_s30 = scalar_lea.hbm %s1354_s0, %s611_s13  ;;  %s246_s29 = sshll.u32 %s238_s17, 4  ;;  %s1175_s29 = int_to_ptr.vmem [resolvable:$true] %s246_s29 }
  0x4b   : > { %p1171_p11 = pnand %p683_p3, %p56_p5  ;;  %s235_s10 = scalar_lea.sflag [#allocation3], %s234_s12 }
  0x4c   : > { %s801_s11 = scalar_lea.hbm %s1167_s30, 64  ;;  %s806_s15 = scalar_lea.hbm %s1354_s0, 128 }
  0x4d   : > { %p802_p0 = scmp.ne.s32.totalorder %s1167_s30, %s801_s11  ;;  %p803_p2 = pneg %p1171_p11 }
  0x4e   : > { %p807_p6 = scmp.lt.u32.totalorder %s1167_s30, %s1354_s0  ;;  %p808_p10 = scmp.lt.u32.totalorder %s806_s15, %s801_s11 }
  0x4f   : > { %p804_p1 = pnand %p803_p2, %p802_p0  ;;  %p810_p5 = scmp.lt.u32.totalorder %s801_s11, %s1167_s30 }
  0x50   : > { %p809_p3 = por %p808_p10, %p807_p6 }
  0x51   : > { %p805_p13 = pneg %p804_p1 }
  0x52   : > { %p811_p7 = por %p810_p5, %p809_p3 }
  0x54   : > { %p812_p12 = pnand %p811_p7, %p805_p13 }
  0x56   : > { %815 = shalt.err (!%p812_p12)
}
  0x57   : > { %s816_s12 = scalar_lea.vmem %s1175_s29, 64  ;;  %s983_s8 = smov [#allocation2]  }
  0x58   : > { %p817_p0 = scmp.ne.s32.totalorder %s1175_s29, %s816_s12  ;;  %s821_s13 = sshll.u32 %s983_s8, 4  ;;  %s822_s13 = int_to_ptr.vmem [resolvable:$false] %s821_s13 }
  0x59   : > { %s823_s16 = scalar_lea.vmem %s822_s13, 128  ;;  %p824_p4 = scmp.lt.s32.totalorder %s1175_s29, %s822_s13 }
  0x5a   : > { %p819_p1 = pnand %p817_p0, %p803_p2  ;;  %p825_p6 = scmp.lt.s32.totalorder %s823_s16, %s816_s12 }
  0x5c   : > { %p820_p9 = pneg %p819_p1  ;;  %p826_p10 = por %p825_p6, %p824_p4 }
  0x5e   : > { %p827_p3 = pnand %p826_p10, %p820_p9 }
  0x60   : > { %830 = shalt.err (!%p827_p3)
}
  0x61   : > { %670 = dma.hbm_to_vmem [thread:$0]  (!%p1171_p11), %s1167_s30, 64, %s1175_s29, %s235_s10  }
  0x62   : > { %255 = sbr.rel (%p1073_p8) target bundleno = 486 (0x1e6), region = 32  ;;  %s1205_s11 = sand.u32 (!%p1073_p8), 1, %s961_s19  }
  0x63   : > { %s1208_s15 = sshll.u32 (!%p1073_p8), %s1205_s11, 2  ;;  %s258_s17 = scalar_lea.sflag (!%p1073_p8), [#allocation3], %s1205_s11 }
  0x64   : > { %s261_s12 = scalar_lea.vmem (!%p1073_p8), [#allocation2], %s1208_s15  ;;  %p1370_p4 = scmp.ne.s32.totalorder (!%p1073_p8), %s1363_s26, 0 }
  0x69   : > { %940 = dma.done.wait (%p1370_p4), %s258_s17, 64  }
  0x6a   : > { %942 = vsyncadd (%p1370_p4), %s258_s17, 4294967232  ;;  %p1371_p9 = scmp.eq.s32.totalorder %s1052_s24, 0 }
  0x6c   : > { %944 = dma.done.wait (%p1371_p9), [#allocation6], 272   ;;  %p1372_p8 = pmov %p1371_p9 }
  0x6d   : > { %v984_v0 = vmov 0.0   ;;  %vm985_vm0 = vmmov 0   ;;  %v743_v1 = vld [vmem:[#allocation5] sm:$0xff]   ;;  %v744_v2 = vld [vmem:[#allocation5 + $0x8] sm:$0xff]   ;;  %v307_v3 = vld [vmem:[%s261_s12] sm:$0xf] }
  0x6e   : > { %946 = vsyncadd (%p1372_p8), [#allocation6], 4294967024  ;;  %636 = vmatprep.subr.bf16.mxu0 %v984_v0  ;;  %640 = vmatprep.mubr.msk.bf16.mxu0 %vm985_vm0, %v984_v0  ;;  %vm331_vm1 = vcmask 261120   ;;  %v619_v4 = vld [vmem:[#allocation7] ss:$0 sm:$0xff]  ;;  %s1221_s26 = sshll.u32 %s969_s21, 6 }
  0x6f   : > { %637 = vmatpush3.bf16.msra.mxu0 %v743_v1  ;;  %s291_s28 = scalar_lea.vmem [#allocation8], %s1208_s15  ;;  %vm376_vm2 = vcmask 257024   ;;  %s1228_s10 = scalar_lea.hbm %s1357_s3, %s1221_s26 }
  0x70   : > { %638 = vmatprep.subr.bf16.mxu0 %v984_v0  ;;  %s414_s30 = sshll.u32 %s291_s28, 4  ;;  %s986_s21 = smov 96   ;;  %s1230_s30 = int_to_ptr.vmem [resolvable:$true] %s414_s30 }
  0x71   : > { %s390_s8 = scalar_lea.sflag [#allocation4], %s1205_s11  ;;  %s831_s13 = scalar_lea.vmem %s1230_s30, 64 }
  0x72   : > { %p832_p11 = scmp.ne.s32.totalorder %s1230_s30, %s831_s13  ;;  %p1373_p2 = scmp.ne.s32.totalorder %s1368_s6, 0 }
  0x73   : > { %639 = vmatpush3.bf16.msra.mxu0 %v744_v2  ;;  %s987_s16 = smov [#allocation8]  }
  0x74   : > { %p833_p13 = pnand %p832_p11, %p1373_p2  ;;  %s835_s17 = sshll.u32 %s987_s16, 4  ;;  %s836_s17 = int_to_ptr.vmem [resolvable:$false] %s835_s17 }
  0x75   : > { %s837_s12 = scalar_lea.vmem %s836_s17, 128  ;;  %p838_p7 = scmp.lt.s32.totalorder %s1230_s30, %s836_s17 }
  0x76   : > { %641 = vmatmul.mubr.msk.bf16.vlgmr.msra.gmra.mrb[0].mxu0 %vm331_vm1, %v307_v3  ;;  %p834_p5 = pneg %p833_p13  ;;  %p839_p12 = scmp.lt.s32.totalorder %s837_s12, %s831_s13 }
  0x78   : > { %p840_p0 = por %p839_p12, %p838_p7 }
  0x7a   : > { %p841_p1 = pnand %p840_p0, %p834_p5 }
 0x149   : > { %v369_v5 = vpop.f32.mrb[0].mxu0 }
 0x14a   : > { %v370_v6 = vadd.f32 %v619_v4, %v369_v5  ;;  %v642_v7 = vpop.f32.mrb[1].mxu0 }
 0x14b   : > { %v372_v8 = vpop.f32.mrb[2].mxu0 }
 0x14c   : > { %v375_v9 = vpack.c.bf16 %v370_v6, %v370_v6  ;;  %v643_v10 = vpop.f32.mrb[3].mxu0 }
 0x14e   : > { %381 = vrot.lane.b32.xlu0 %v375_v9, %s986_s21  ;;  %377 = vst.msk [vmem:[%s291_s28] sm:$0xf] %vm376_vm2, %v375_v9 }
 0x14f   : > { %844 = shalt.err (!%p841_p1)
}
 0x150   : > { %s845_s11 = scalar_lea.hbm %s1228_s10, 64  ;;  %s849_s7 = scalar_lea.hbm %s1357_s3, 128 }
 0x151   : > { %p846_p6 = scmp.ne.s32.totalorder %s1228_s10, %s845_s11  ;;  %p850_p4 = scmp.lt.u32.totalorder %s1228_s10, %s1357_s3 }
 0x152   : > { %p851_p9 = scmp.lt.u32.totalorder %s849_s7, %s845_s11  ;;  %p853_p11 = scmp.lt.u32.totalorder %s845_s11, %s1228_s10 }
 0x153   : > { %p847_p10 = pnand %p846_p6, %p1373_p2 }
 0x154   : > { %p852_p8 = por %p851_p9, %p850_p4 }
 0x155   : > { %p848_p3 = pneg %p847_p10 }
 0x156   : > { %p854_p13 = por %p853_p11, %p852_p8 }
 0x158   : > { %p855_p5 = pnand %p854_p13, %p848_p3 }
 0x15a   : > { %858 = shalt.err (!%p855_p5)
}
 0x15b   : > { %654 = dma.vmem_to_hbm [thread:$0]  (%p1373_p2), %s1230_s30, 64, %s1228_s10, %s390_s8  }
 0x15c   : > { %s988_s13 = smov 64   ;;  %s394_s17 = sand.u32 1, %s1052_s24  }
 0x15d   : > { %385 = vrot.lane.b32.xlu0 %v375_v9, %s988_s13  ;;  %s298_s12 = scalar_lea.vmem [#allocation9], %s1208_s15  ;;  %s1261_s7 = scalar_lea.hbm %s1358_s4, %s1221_s26 }
 0x15e   : > { %s428_s28 = sshll.u32 %s298_s12, 4  ;;  %s305_s21 = scalar_lea.vmem [#allocation11], %s1208_s15  ;;  %s1263_s28 = int_to_ptr.vmem [resolvable:$true] %s428_s28 }
 0x15f   : > { %s1268_s16 = sshll.u32 %s305_s21, 4  ;;  %s1271_s24 = scalar_lea.sflag [#allocation10], %s394_s17  ;;  %s1302_s16 = int_to_ptr.vmem [resolvable:$true] %s1268_s16 }
 0x160   : > { %s859_s30 = scalar_lea.vmem %s1263_s28, 64  ;;  %s989_s10 = smov [#allocation9]  }
 0x161   : > { %p860_p7 = scmp.ne.s32.totalorder %s1263_s28, %s859_s30  ;;  %s863_s8 = sshll.u32 %s989_s10, 4  ;;  %s864_s8 = int_to_ptr.vmem [resolvable:$false] %s863_s8 }
 0x162   : > { %s865_s13 = scalar_lea.vmem %s864_s8, 128  ;;  %p866_p1 = scmp.lt.s32.totalorder %s1263_s28, %s864_s8 }
 0x163   : > { %p861_p12 = pnand %p860_p7, %p1373_p2  ;;  %p867_p6 = scmp.lt.s32.totalorder %s865_s13, %s859_s30 }
 0x165   : > { %p862_p0 = pneg %p861_p12  ;;  %p868_p10 = por %p867_p6, %p866_p1 }
 0x167   : > { %p869_p3 = pnand %p868_p10, %p862_p0 }
 0x1c0   : > { %v382_v11 = vpop.permute.xlu0 %381 }
 0x1c1   : > { %384 = vst.msk [vmem:[%s298_s12] sm:$0xf] %vm376_vm2, %v382_v11 }
 0x1c2   : > { %872 = shalt.err (!%p869_p3)
}
 0x1c3   : > { %s873_s17 = scalar_lea.hbm %s1261_s7, 64  ;;  %s877_s29 = scalar_lea.hbm %s1358_s4, 128 }
 0x1c4   : > { %p874_p4 = scmp.ne.s32.totalorder %s1261_s7, %s873_s17  ;;  %p878_p11 = scmp.lt.u32.totalorder %s1261_s7, %s1358_s4 }
 0x1c5   : > { %p879_p13 = scmp.lt.u32.totalorder %s877_s29, %s873_s17  ;;  %p881_p7 = scmp.lt.u32.totalorder %s873_s17, %s1261_s7 }
 0x1c6   : > { %p875_p9 = pnand %p874_p4, %p1373_p2 }
 0x1c7   : > { %p880_p5 = por %p879_p13, %p878_p11 }
 0x1c8   : > { %p876_p8 = pneg %p875_p9 }
 0x1c9   : > { %p882_p12 = por %p881_p7, %p880_p5 }
 0x1cb   : > { %p883_p0 = pnand %p882_p12, %p876_p8 }
 0x1cd   : > { %886 = shalt.err (!%p883_p0)
}
 0x1ce   : > { %655 = dma.vmem_to_hbm [thread:$0]  (%p1373_p2), %s1263_s28, 64, %s1261_s7, %s1271_s24  }
 0x1cf   : > { %s1299_s12 = scalar_lea.hbm %s1359_s5, %s1221_s26  ;;  %v386_v12 = vpop.permute.xlu0 %385  ;;  %s887_s17 = scalar_lea.vmem %s1302_s16, 64 }
 0x1d0   : > { %388 = vst.msk [vmem:[%s305_s21] sm:$0xf] %vm376_vm2, %v386_v12  ;;  %p888_p1 = scmp.ne.s32.totalorder %s1302_s16, %s887_s17  ;;  %s990_s28 = smov [#allocation11]  }
 0x1d1   : > { %s891_s7 = sshll.u32 %s990_s28, 4  ;;  %s892_s7 = int_to_ptr.vmem [resolvable:$false] %s891_s7 }
 0x1d2   : > { %p889_p6 = pnand %p888_p1, %p1373_p2  ;;  %s893_s11 = scalar_lea.vmem %s892_s7, 128 }
 0x1d3   : > { %p894_p3 = scmp.lt.s32.totalorder %s1302_s16, %s892_s7  ;;  %p895_p4 = scmp.lt.s32.totalorder %s893_s11, %s887_s17 }
 0x1d4   : > { %p890_p10 = pneg %p889_p6 }
 0x1d5   : > { %p896_p9 = por %p895_p4, %p894_p3 }
 0x1d7   : > { %p897_p8 = pnand %p896_p9, %p890_p10 }
 0x1d9   : > { %900 = shalt.err (!%p897_p8)
}
 0x1da   : > { %s901_s15 = scalar_lea.hbm %s1299_s12, 64  ;;  %s905_s29 = scalar_lea.hbm %s1359_s5, 128 }
 0x1db   : > { %p902_p11 = scmp.ne.s32.totalorder %s1299_s12, %s901_s15  ;;  %p906_p7 = scmp.lt.u32.totalorder %s1299_s12, %s1359_s5 }
 0x1dc   : > { %p907_p12 = scmp.lt.u32.totalorder %s905_s29, %s901_s15  ;;  %p909_p1 = scmp.lt.u32.totalorder %s901_s15, %s1299_s12 }
 0x1dd   : > { %p903_p13 = pnand %p902_p11, %p1373_p2 }
 0x1de   : > { %p908_p0 = por %p907_p12, %p906_p7 }
 0x1df   : > { %p904_p5 = pneg %p903_p13 }
 0x1e0   : > { %p910_p6 = por %p909_p1, %p908_p0 }
 0x1e2   : > { %p911_p10 = pnand %p910_p6, %p904_p5 }
 0x1e4   : > { %914 = shalt.err (!%p911_p10)
}
 0x1e5   : > { %656 = dma.vmem_to_hbm [thread:$0]  (%p1373_p2), %s1302_s16, 64, %s1299_s12, %s1271_s24  }
 0x1e6 PF: > { %s454_s30 = sand.u32 1, %s957_s18   ;;  %p1374_p3 = scmp.ne.s32.totalorder %s1364_s27, 0 }
 0x1e7   : > { %p1375_p4 = scmp.ge.s32.totalorder %s977_s23, 2  ;;  %s455_s13 = scalar_lea.sflag [#allocation4], %s454_s30 }
 0x1e9   : > { %p672_p9 = pnand %p1375_p4, %p1374_p3 }
 0x1eb   : > { %948 = dma.done.wait (!%p672_p9), %s455_s13, 64  }
 0x1ec   : > { %950 = vsyncadd (!%p672_p9), %s455_s13, 4294967232  ;;  %s463_s17 = sand.u32 1, %s605_s25  }
 0x1ed   : > { %s464_s28 = scalar_lea.sflag [#allocation10], %s463_s17 }
 0x1ee   : > { %952 = dma.done.wait (!%p672_p9), %s464_s28, 128  }
 0x1ef   : > { %954 = vsyncadd (!%p672_p9), %s464_s28, 4294967168  ;;  %s26_s23 = sadd.s32 1, %s977_s23   ;;  %s1376_s18 = smov %s961_s19 }
 0x1f0   : > { %p23_p2 = scmp.ge.s32.totalorder %s26_s23, 4   ;;  %s1377_s19 = smov %s965_s20 }
 0x1f1   : > { %s1378_s20 = smov %s1162_s14  ;;  %s1379_s21 = smov %s973_s22 }
 0x1f2   : > { %s1380_s22 = smov %s1382_s9  ;;  %25 = sbr.rel (!%p23_p2) target bundleno = 9 (0x9), region = 117 }
 0x1f9   :  { %478 = vsyncpa [#allocation3], 1 }
 0x1fa   :  { %480 = vsyncpa [#allocation3 + $0x1], 1 }
 0x1fb   :  { %481 = vsyncpa [#allocation6], 1 }
 0x1fc   :  { %482 = vsyncpa [#allocation4], 1 }
 0x1fd   :  { %484 = vsyncpa [#allocation4 + $0x1], 1 }
 0x1fe   :  { %485 = vsyncpa [#allocation10], 1 }
 0x1ff   :  { %487 = vsyncpa [#allocation10 + $0x1], 1 }

</bundles_post_ra>
